<compile_context>
chip_gen: v5e
topology: v5e:2x2
jax: 0.10.0
libtpu: 0.0.40
codegen_flags: <defaults>
</compile_context>

<pallas_src>
import functools

import jax
import jax.numpy as jnp
from jax.experimental import pallas as pl
from jax.experimental.pallas import tpu as pltpu


def conv_bn_relu_kernel(patches_ref, w_ref, gamma_ref, beta_ref, out_ref,
                        *, c_out, m_total):
    # patches: [M/P, P*K]      packed im2col rows
    # w:       [P*K, P*C_out]  block-diagonal conv weight
    # gamma/beta: [1, P*C_out] (tiled P times)
    # out:     [M/P, P*C_out]  row-major identical to logical [M, C_out]
    eps = 1e-5

    # Conv as packed im2col matmul on the MXU, f32 accumulation.
    # (conv bias intentionally omitted: train-mode BN removes it via the mean)
    y = jnp.dot(patches_ref[...], w_ref[...], preferred_element_type=jnp.float32)

    # Single-pass BN statistics over the row axis.
    s1 = jnp.sum(y, axis=0, keepdims=True)       # [1, P*C_out]   sum(y)
    s2 = jnp.sum(y * y, axis=0, keepdims=True)   # [1, P*C_out]   sum(y^2)

    # Butterfly-fold the P groups of c_out lanes with XLU rolls; after log2(P)
    # steps every c_out-lane group holds the full per-channel sum (fold +
    # broadcast in one, no separate tile/broadcast needed).
    # pltpu.roll needs a non-negative axis -> use the explicit lane axis.
    lane_axis = s1.ndim - 1
    lanes = s1.shape[-1]
    shift = lanes // 2
    while shift >= c_out:
        s1 = s1 + pltpu.roll(s1, shift=shift, axis=lane_axis)
        s2 = s2 + pltpu.roll(s2, shift=shift, axis=lane_axis)
        shift //= 2

    inv_m = 1.0 / m_total
    mean = s1 * inv_m
    var = s2 * inv_m - mean * mean               # E[y^2] - E[y]^2 (biased, train-mode)

    scale = gamma_ref[...] * jax.lax.rsqrt(var + eps)
    shift_b = beta_ref[...] - mean * scale

    # Affine + ReLU, lane-dense store.
    out_ref[...] = jnp.maximum(y * scale + shift_b, 0.0)


def im2col_3x3_pad1(x):
    """x: [N, C, H, W] -> patches [N*H*W, C*9], column order (ci, kh, kw)."""
    N, C, H, W = x.shape
    xp = jnp.pad(x, ((0, 0), (0, 0), (1, 1), (1, 1)))
    cols = [xp[:, :, kh:kh + H, kw:kw + W] for kh in range(3) for kw in range(3)]
    patches = jnp.stack(cols, axis=2)                 # [N, C, 9, H, W]
    patches = patches.transpose(0, 3, 4, 1, 2)        # [N, H, W, C, 9]
    return patches.reshape(N * H * W, C * 9)


def test_model_forward(x, conv_w, conv_b, gamma, beta):
    """x: [N, 3, H, W] (NCHW).  Returns [N, 64, H, W] (NCHW), float32.

    conv_b is accepted for API parity but has no effect under training-mode
    BatchNorm (subtracted out by the batch mean), so it is not sent to the
    kernel.
    """
    del conv_b  # mathematically dead under train-mode BN
    N, C_in, H, W = x.shape
    C_out = conv_w.shape[0]
    M = N * H * W
    K = C_in * 9

    # Row-packing factor: make the output >=128 lanes wide and the MXU
    # contraction deeper.  P must be a power of two dividing M.
    P = 4 if M % 4 == 0 else (2 if M % 2 == 0 else 1)

    # im2col emitted directly in the packed [M/P, P*K] layout (single reshape,
    # row-major identical to [M, K]).
    patches = im2col_3x3_pad1(x).astype(jnp.float32).reshape(M // P, P * K)

    # Block-diagonal weight diag(W, W, ..., W) of shape [P*K, P*C_out].
    w2d = conv_w.reshape(C_out, K).T.astype(jnp.float32)             # [K, C_out]
    eye = jnp.eye(P, dtype=jnp.float32)
    w_blk = jnp.einsum('pq,kc->pkqc', eye, w2d).reshape(P * K, P * C_out)

    g2d = jnp.tile(gamma.reshape(1, C_out).astype(jnp.float32), (1, P))
    be2d = jnp.tile(beta.reshape(1, C_out).astype(jnp.float32), (1, P))

    kernel = functools.partial(conv_bn_relu_kernel, c_out=C_out, m_total=M)

    cost = pl.CostEstimate(
        flops=2 * M * K * C_out,
        transcendentals=0,
        bytes_accessed=4 * (M * K + P * K * P * C_out + 2 * P * C_out + M * C_out),
    )

    # Small problem: single grid point, everything resident in VMEM.
    out_packed = pl.pallas_call(
        kernel,
        out_shape=jax.ShapeDtypeStruct((M // P, P * C_out), jnp.float32),
        in_specs=[pl.BlockSpec(memory_space=pltpu.MemorySpace.VMEM)] * 4,
        out_specs=pl.BlockSpec(memory_space=pltpu.MemorySpace.VMEM),
        cost_estimate=cost,
    )(patches, w_blk, g2d, be2d)

    # Packed [M/P, P*C_out] is row-major identical to [M, C_out].
    return out_packed.reshape(N, H, W, C_out).transpose(0, 3, 1, 2)


def reference_forward(x, conv_w, conv_b, gamma, beta):
    """Pure-JAX reference (conv + bias + train-mode batchnorm + relu), NCHW."""
    y = jax.lax.conv_general_dilated(
        x.astype(jnp.float32), conv_w.astype(jnp.float32),
        window_strides=(1, 1), padding=((1, 1), (1, 1)),
        dimension_numbers=("NCHW", "OIHW", "NCHW"))
    y = y + conv_b.reshape(1, -1, 1, 1)
    mean = jnp.mean(y, axis=(0, 2, 3), keepdims=True)
    var = jnp.mean((y - mean) ** 2, axis=(0, 2, 3), keepdims=True)
    y_hat = (y - mean) * jax.lax.rsqrt(var + 1e-5)
    z = y_hat * gamma.reshape(1, -1, 1, 1) + beta.reshape(1, -1, 1, 1)
    return jnp.maximum(z, 0.0)


if __name__ == "__main__":
    key = jax.random.PRNGKey(0)
    k_x, k_w, k_b, k_g, k_be = jax.random.split(key, 5)

    N, C_in, H, W, C_out = 2, 3, 16, 16, 64

    x = jax.random.normal(k_x, (N, C_in, H, W), dtype=jnp.float32)

    # Deterministic parameter init (shapes from nn.Conv2d(3,64,3,padding=1)
    # + BatchNorm2d(64, affine=True)).
    fan_in = C_in * 3 * 3
    bound = 1.0 / (fan_in ** 0.5)
    conv_w = jax.random.uniform(k_w, (C_out, C_in, 3, 3), jnp.float32, -bound, bound)
    conv_b = jax.random.uniform(k_b, (C_out,), jnp.float32, -bound, bound)
    # Non-trivial affine params to exercise the BN affine path.
    gamma = jax.random.uniform(k_g, (C_out,), jnp.float32, 0.5, 1.5)
    beta = jax.random.uniform(k_be, (C_out,), jnp.float32, -0.5, 0.5)

    out = jax.block_until_ready(test_model_forward(x, conv_w, conv_b, gamma, beta))

    ref = reference_forward(x, conv_w, conv_b, gamma, beta)
    assert out.shape == (N, C_out, H, W)
    assert jnp.allclose(out, ref, atol=1e-4, rtol=1e-4), "mismatch vs reference"

    print("KERNEL_OK")
</pallas_src>

<mosaic_0001>
module attributes {stable_mosaic.version = 11 : i64} {
  func.func @conv_bn_relu_kernel(%arg0: memref<128x108xf32, #tpu.memory_space<vmem>>, %arg1: memref<108x256xf32, #tpu.memory_space<vmem>>, %arg2: memref<1x256xf32, #tpu.memory_space<vmem>>, %arg3: memref<1x256xf32, #tpu.memory_space<vmem>>, %arg4: memref<128x256xf32, #tpu.memory_space<vmem>>) attributes {dimension_semantics = [], scalar_prefetch = 0 : i64, scratch_operands = 0 : i64, tpu.core_type = #tpu.core_type<tc>} {
    %c0 = arith.constant 0 : index
    %c0_0 = arith.constant 0 : index
    %0 = vector.load %arg0[%c0, %c0_0] : memref<128x108xf32, #tpu.memory_space<vmem>>, vector<128x108xf32>
    %c0_1 = arith.constant 0 : index
    %c0_2 = arith.constant 0 : index
    %1 = vector.load %arg1[%c0_1, %c0_2] : memref<108x256xf32, #tpu.memory_space<vmem>>, vector<108x256xf32>
    %cst = arith.constant dense<0.000000e+00> : vector<128x256xf32>
    %2 = tpu.matmul %0, %1, %cst {dimension_numbers = #tpu.dot_dimension_numbers<[1], [0], [0], [1], [0, 0, 1, 1], [], []>} : vector<128x108xf32>, vector<108x256xf32>, vector<128x256xf32> -> vector<128x256xf32>
    %cst_3 = arith.constant dense<0.000000e+00> : vector<256xf32>
    %3 = vector.multi_reduction <add>, %2, %cst_3 [0] : vector<128x256xf32> to vector<256xf32>
    %4 = vector.shape_cast %3 : vector<256xf32> to vector<1x256xf32>
    %5 = arith.mulf %2, %2 : vector<128x256xf32>
    %cst_4 = arith.constant dense<0.000000e+00> : vector<256xf32>
    %6 = vector.multi_reduction <add>, %5, %cst_4 [0] : vector<128x256xf32> to vector<256xf32>
    %7 = vector.shape_cast %6 : vector<256xf32> to vector<1x256xf32>
    %c128_i32 = arith.constant 128 : i32
    %8 = tpu.dynamic_rotate %4 by %c128_i32 dim 1 : vector<1x256xf32>, i32 -> vector<1x256xf32>
    %9 = arith.addf %4, %8 : vector<1x256xf32>
    %c128_i32_5 = arith.constant 128 : i32
    %10 = tpu.dynamic_rotate %7 by %c128_i32_5 dim 1 : vector<1x256xf32>, i32 -> vector<1x256xf32>
    %11 = arith.addf %7, %10 : vector<1x256xf32>
    %c64_i32 = arith.constant 64 : i32
    %12 = tpu.dynamic_rotate %9 by %c64_i32 dim 1 : vector<1x256xf32>, i32 -> vector<1x256xf32>
    %13 = arith.addf %9, %12 : vector<1x256xf32>
    %c64_i32_6 = arith.constant 64 : i32
    %14 = tpu.dynamic_rotate %11 by %c64_i32_6 dim 1 : vector<1x256xf32>, i32 -> vector<1x256xf32>
    %15 = arith.addf %11, %14 : vector<1x256xf32>
    %cst_7 = arith.constant 0.001953125 : f32
    %16 = vector.broadcast %cst_7 : f32 to vector<1x256xf32>
    %17 = arith.mulf %13, %16 : vector<1x256xf32>
    %cst_8 = arith.constant 0.001953125 : f32
    %18 = vector.broadcast %cst_8 : f32 to vector<1x256xf32>
    %19 = arith.mulf %15, %18 : vector<1x256xf32>
    %20 = arith.mulf %17, %17 : vector<1x256xf32>
    %21 = arith.subf %19, %20 : vector<1x256xf32>
    %c0_9 = arith.constant 0 : index
    %c0_10 = arith.constant 0 : index
    %22 = vector.load %arg2[%c0_9, %c0_10] : memref<1x256xf32, #tpu.memory_space<vmem>>, vector<1x256xf32>
    %cst_11 = arith.constant 9.99999974E-6 : f32
    %23 = vector.broadcast %cst_11 : f32 to vector<1x256xf32>
    %24 = arith.addf %21, %23 : vector<1x256xf32>
    %25 = math.rsqrt %24 : vector<1x256xf32>
    %26 = arith.mulf %22, %25 : vector<1x256xf32>
    %c0_12 = arith.constant 0 : index
    %c0_13 = arith.constant 0 : index
    %27 = vector.load %arg3[%c0_12, %c0_13] : memref<1x256xf32, #tpu.memory_space<vmem>>, vector<1x256xf32>
    %28 = arith.mulf %17, %26 : vector<1x256xf32>
    %29 = arith.subf %27, %28 : vector<1x256xf32>
    %30 = vector.broadcast %26 : vector<1x256xf32> to vector<128x256xf32>
    %31 = arith.mulf %2, %30 : vector<128x256xf32>
    %32 = vector.broadcast %29 : vector<1x256xf32> to vector<128x256xf32>
    %33 = arith.addf %31, %32 : vector<128x256xf32>
    %cst_14 = arith.constant 0.000000e+00 : f32
    %34 = vector.broadcast %cst_14 : f32 to vector<128x256xf32>
    %35 = arith.maximumf %33, %34 : vector<128x256xf32>
    %c0_15 = arith.constant 0 : index
    %c0_16 = arith.constant 0 : index
    %36 = vector.load %arg4[%c0_15, %c0_16] : memref<128x256xf32, #tpu.memory_space<vmem>>, vector<128x256xf32>
    tpu.vector_store %arg4[%c0_15, %c0_16], %35 {strides = array<i32>} : memref<128x256xf32, #tpu.memory_space<vmem>>, vector<128x256xf32>,
    return
  }
}

</mosaic_0001>

<bundles_post_ra>
// kernel: tpu_custom_call.1
= control target key start
LH: loop header
LB: loop body
LE: loop exit
PB: predicated region body
PF: predicated region fallthrough
CT: control target
= control target key end

     0   :  { %vm111_vm0 = vcmask 1043456   ;;  %s1123_s0 = inlined_call_operand.vmem [shape: f32[128,108], index: 0, kind: input, shape index: {}]   ;;  %s1124_s1 = inlined_call_operand.vmem [shape: f32[108,256], index: 1, kind: input, shape index: {}]   ;;  %s1125_s2 = inlined_call_operand.vmem [shape: f32[1,256], index: 2, kind: input, shape index: {}]   ;;  %s1126_s3 = inlined_call_operand.vmem [shape: f32[1,256], index: 3, kind: input, shape index: {}]   ;;  %s1127_s4 = inlined_call_operand.hbm [shape: f32[128,256], index: 4, kind: output, shape index: {}]  }
   0x1   :  { %v60_v0 = vld [vmem:[%s1124_s1 + $0xd0] sm:$0xf]  ;;  %v61_v1 = vld [vmem:[%s1124_s1 + $0xd8] sm:$0xf]  ;;  %v58_v2 = vld [vmem:[%s1124_s1 + $0xc0] sm:$0xff] }
   0x2   :  { %561 = vmatpush.msk.msra.mxu0 %vm111_vm0, %v60_v0  ;;  %578 = vmatpush.msk.msra.mxu1 %vm111_vm0, %v61_v1  ;;  %v59_v3 = vld [vmem:[%s1124_s1 + $0xc8] sm:$0xff]  ;;  %v56_v4 = vld [vmem:[%s1124_s1 + $0xb0] sm:$0xff]  ;;  %v57_v5 = vld [vmem:[%s1124_s1 + $0xb8] sm:$0xff] }
   0x3   :  { %595 = vmatpush.msk.msra.mxu2 %vm111_vm0, %v60_v0  ;;  %609 = vmatpush.msk.msra.mxu3 %vm111_vm0, %v61_v1  ;;  %v54_v6 = vld [vmem:[%s1124_s1 + $0xa0] sm:$0xff]  ;;  %v55_v7 = vld [vmem:[%s1124_s1 + $0xa8] sm:$0xff]  ;;  %v52_v8 = vld [vmem:[%s1124_s1 + $0x90] sm:$0xff] }
   0x4   :  { %121 = vmatpush.msra.mxu0 %v58_v2  ;;  %186 = vmatpush.msra.mxu1 %v59_v3  ;;  %v53_v9 = vld [vmem:[%s1124_s1 + $0x98] sm:$0xff]  ;;  %v50_v10 = vld [vmem:[%s1124_s1 + $0x80] sm:$0xff]  ;;  %v51_v11 = vld [vmem:[%s1124_s1 + $0x88] sm:$0xff] }
   0x5   :  { %596 = vmatpush.msra.mxu2 %v58_v2  ;;  %610 = vmatpush.msra.mxu3 %v59_v3  ;;  %v48_v12 = vld [vmem:[%s1124_s1 + $0x70] sm:$0xff]  ;;  %v49_v13 = vld [vmem:[%s1124_s1 + $0x78] sm:$0xff] }
   0x6   :  { %122 = vmatpush.msra.mxu0 %v56_v4  ;;  %187 = vmatpush.msra.mxu1 %v57_v5 }
   0x7   :  { %597 = vmatpush.msra.mxu2 %v56_v4  ;;  %611 = vmatpush.msra.mxu3 %v57_v5 }
   0x8   :  { %123 = vmatpush.msra.mxu0 %v54_v6  ;;  %188 = vmatpush.msra.mxu1 %v55_v7 }
   0x9   :  { %598 = vmatpush.msra.mxu2 %v54_v6  ;;  %612 = vmatpush.msra.mxu3 %v55_v7 }
   0xa   :  { %124 = vmatpush.msra.mxu0 %v52_v8  ;;  %189 = vmatpush.msra.mxu1 %v53_v9 }
   0xb   :  { %599 = vmatpush.msra.mxu2 %v52_v8  ;;  %613 = vmatpush.msra.mxu3 %v53_v9 }
   0xc   :  { %9 = vsyncpa [#allocation3], 0  ;;  %125 = vmatpush.msra.mxu0 %v50_v10  ;;  %190 = vmatpush.msra.mxu1 %v51_v11  ;;  %v46_v14 = vld [vmem:[%s1124_s1 + $0x60] sm:$0xff]  ;;  %v47_v15 = vld [vmem:[%s1124_s1 + $0x68] sm:$0xff]  ;;  %vm62_vm1 = vcmask 883712   ;;  %vm392_vm5 = vcmask 1040384  }
   0xd   :  { %600 = vmatpush.msra.mxu2 %v50_v10  ;;  %614 = vmatpush.msra.mxu3 %v51_v11  ;;  %v44_v16 = vld [vmem:[%s1124_s1 + $0x50] sm:$0xff]  ;;  %v45_v17 = vld [vmem:[%s1124_s1 + $0x58] sm:$0xff]  ;;  %v42_v18 = vld [vmem:[%s1124_s1 + $0x40] sm:$0xff]  ;;  %s549_s29 = sshll.u32 %s1127_s4, 4  ;;  %s657_s30 = smov 256   ;;  %s550_s29 = int_to_ptr.hbm [resolvable:$true] %s549_s29 }
   0xe   :  { %126 = vmatpush.msra.mxu0 %v48_v12  ;;  %191 = vmatpush.msra.mxu1 %v49_v13  ;;  %v43_v19 = vld [vmem:[%s1124_s1 + $0x48] sm:$0xff]  ;;  %v40_v20 = vld [vmem:[%s1124_s1 + $0x30] sm:$0xff]  ;;  %v41_v21 = vld [vmem:[%s1124_s1 + $0x38] sm:$0xff]  ;;  %s658_s5 = smov 16  }
   0xf   :  { %601 = vmatpush.msra.mxu2 %v48_v12  ;;  %615 = vmatpush.msra.mxu3 %v49_v13  ;;  %v38_v22 = vld [vmem:[%s1124_s1 + $0x20] sm:$0xff]  ;;  %v39_v23 = vld [vmem:[%s1124_s1 + $0x28] sm:$0xff]  ;;  %v36_v24 = vld [vmem:[%s1124_s1 + $0x10] sm:$0xff] }
  0x10   :  { %127 = vmatpush.msra.mxu0 %v46_v14  ;;  %192 = vmatpush.msra.mxu1 %v47_v15  ;;  %v37_v25 = vld [vmem:[%s1124_s1 + $0x18] sm:$0xff]  ;;  %v34_v26 = vld [vmem:[%s1124_s1] sm:$0xff]  ;;  %v35_v27 = vld [vmem:[%s1124_s1 + $0x8] sm:$0xff] }
  0x11   :  { %602 = vmatpush.msra.mxu2 %v46_v14  ;;  %616 = vmatpush.msra.mxu3 %v47_v15  ;;  %v18_v28 = vld [vmem:[%s1123_s0] sm:$0xff]  ;;  %v19_v30 = vld [vmem:[%s1123_s0 + $0x8] sm:$0xff]  ;;  %v20_v32 = vld [vmem:[%s1123_s0 + $0x10] sm:$0xff] }
  0x12   :  { %128 = vmatpush.msra.mxu0 %v44_v16  ;;  %193 = vmatpush.msra.mxu1 %v45_v17  ;;  %v26_v29 = vld [vmem:[%s1123_s0 + $0x40] sm:$0xff]  ;;  %v27_v31 = vld [vmem:[%s1123_s0 + $0x48] sm:$0xff]  ;;  %v28_v33 = vld [vmem:[%s1123_s0 + $0x50] sm:$0xff] }
  0x13   :  { %603 = vmatpush.msra.mxu2 %v44_v16  ;;  %617 = vmatpush.msra.mxu3 %v45_v17  ;;  %v21_v34 = vld [vmem:[%s1123_s0 + $0x18] sm:$0xff]  ;;  %v22_v36 = vld [vmem:[%s1123_s0 + $0x20] sm:$0xff]  ;;  %v23_v38 = vld [vmem:[%s1123_s0 + $0x28] sm:$0xff] }
  0x14   :  { %129 = vmatpush.msra.mxu0 %v42_v18  ;;  %194 = vmatpush.msra.mxu1 %v43_v19  ;;  %v29_v35 = vld [vmem:[%s1123_s0 + $0x58] sm:$0xff]  ;;  %v30_v37 = vld [vmem:[%s1123_s0 + $0x60] sm:$0xff]  ;;  %v31_v39 = vld [vmem:[%s1123_s0 + $0x68] sm:$0xff] }
  0x15   :  { %604 = vmatpush.msra.mxu2 %v42_v18  ;;  %618 = vmatpush.msra.mxu3 %v43_v19  ;;  %v24_v40 = vld [vmem:[%s1123_s0 + $0x30] sm:$0xff]  ;;  %v25_v42 = vld [vmem:[%s1123_s0 + $0x38] sm:$0xff] }
  0x16   :  { %130 = vmatpush.msra.mxu0 %v40_v20  ;;  %195 = vmatpush.msra.mxu1 %v41_v21  ;;  %v32_v41 = vld [vmem:[%s1123_s0 + $0x70] sm:$0xff]  ;;  %v33_v43 = vld [vmem:[%s1123_s0 + $0x78] sm:$0xff]  ;;  %s655_s0 = smov 64  }
  0x17   :  { %605 = vmatpush.msra.mxu2 %v40_v20  ;;  %619 = vmatpush.msra.mxu3 %v41_v21 }
  0x18   :  { %131 = vmatpush.msra.mxu0 %v38_v22  ;;  %196 = vmatpush.msra.mxu1 %v39_v23 }
  0x19   :  { %606 = vmatpush.msra.mxu2 %v38_v22  ;;  %620 = vmatpush.msra.mxu3 %v39_v23 }
  0x1a   :  { %132 = vmatpush.msra.mxu0 %v36_v24  ;;  %197 = vmatpush.msra.mxu1 %v37_v25 }
  0x1b   :  { %607 = vmatpush.msra.mxu2 %v36_v24  ;;  %621 = vmatpush.msra.mxu3 %v37_v25 }
  0x1c   :  { %133 = vmatpush.msra.mxu0 %v34_v26  ;;  %198 = vmatpush.msra.mxu1 %v35_v27 }
  0x1d   :  { %562 = vmatmul.msk.f32.vlgmr.msra.gmra.mxu0 %vm62_vm1, %v18_v28  ;;  %579 = vmatmul.msk.f32.vlgmr.msra.gmra.mxu1 %vm62_vm1, %v18_v28 }
  0x1e   :  { %608 = vmatpush.msra.mxu2 %v34_v26  ;;  %622 = vmatpush.msra.mxu3 %v35_v27 }
  0x1f   :  { %570 = vmatmul.msk.f32.vlgmr.msra.gmra.mxu2 %vm62_vm1, %v26_v29  ;;  %587 = vmatmul.msk.f32.vlgmr.msra.gmra.mxu3 %vm62_vm1, %v26_v29 }
  0x25   :  { %563 = vmatmul.msk.f32.gmra.mxu0 %vm62_vm1, %v19_v30  ;;  %580 = vmatmul.msk.f32.gmra.mxu1 %vm62_vm1, %v19_v30 }
  0x27   :  { %571 = vmatmul.msk.f32.gmra.mxu2 %vm62_vm1, %v27_v31  ;;  %588 = vmatmul.msk.f32.gmra.mxu3 %vm62_vm1, %v27_v31 }
  0x2d   :  { %564 = vmatmul.msk.f32.gmra.mxu0 %vm62_vm1, %v20_v32  ;;  %581 = vmatmul.msk.f32.gmra.mxu1 %vm62_vm1, %v20_v32 }
  0x2f   :  { %572 = vmatmul.msk.f32.gmra.mxu2 %vm62_vm1, %v28_v33  ;;  %589 = vmatmul.msk.f32.gmra.mxu3 %vm62_vm1, %v28_v33 }
  0x35   :  { %565 = vmatmul.msk.f32.gmra.mxu0 %vm62_vm1, %v21_v34  ;;  %582 = vmatmul.msk.f32.gmra.mxu1 %vm62_vm1, %v21_v34 }
  0x37   :  { %573 = vmatmul.msk.f32.gmra.mxu2 %vm62_vm1, %v29_v35  ;;  %590 = vmatmul.msk.f32.gmra.mxu3 %vm62_vm1, %v29_v35 }
  0x3d   :  { %566 = vmatmul.msk.f32.gmra.mxu0 %vm62_vm1, %v22_v36  ;;  %583 = vmatmul.msk.f32.gmra.mxu1 %vm62_vm1, %v22_v36 }
  0x3f   :  { %574 = vmatmul.msk.f32.gmra.mxu2 %vm62_vm1, %v30_v37  ;;  %591 = vmatmul.msk.f32.gmra.mxu3 %vm62_vm1, %v30_v37 }
  0x45   :  { %567 = vmatmul.msk.f32.gmra.mxu0 %vm62_vm1, %v23_v38  ;;  %584 = vmatmul.msk.f32.gmra.mxu1 %vm62_vm1, %v23_v38 }
  0x47   :  { %575 = vmatmul.msk.f32.gmra.mxu2 %vm62_vm1, %v31_v39  ;;  %592 = vmatmul.msk.f32.gmra.mxu3 %vm62_vm1, %v31_v39 }
  0x4d   :  { %568 = vmatmul.msk.f32.gmra.mxu0 %vm62_vm1, %v24_v40  ;;  %585 = vmatmul.msk.f32.gmra.mxu1 %vm62_vm1, %v24_v40 }
  0x4f   :  { %576 = vmatmul.msk.f32.gmra.mxu2 %vm62_vm1, %v32_v41  ;;  %593 = vmatmul.msk.f32.gmra.mxu3 %vm62_vm1, %v32_v41 }
  0x55   :  { %569 = vmatmul.msk.f32.gmra.mxu0 %vm62_vm1, %v25_v42  ;;  %586 = vmatmul.msk.f32.gmra.mxu1 %vm62_vm1, %v25_v42 }
  0x57   :  { %577 = vmatmul.msk.f32.gmra.mxu2 %vm62_vm1, %v33_v43  ;;  %594 = vmatmul.msk.f32.gmra.mxu3 %vm62_vm1, %v33_v43 }
  0x9a   :  { %v848_v44 = vpop.f32.mrf.mxu0  ;;  %v850_v45 = vpop.f32.mrf.mxu1 }
  0x9b   :  { %v290_v4 = vmul.f32 %v848_v44, %v848_v44  ;;  %v291_v5 = vmul.f32 %v850_v45, %v850_v45 }
  0xa2   :  { %v852_v46 = vpop.f32.mrf.mxu0  ;;  %v854_v47 = vpop.f32.mrf.mxu1 }
  0xa3   :  { %v856_v48 = vpop.f32.mrf.mxu2  ;;  %v858_v49 = vpop.f32.mrf.mxu3  ;;  %v292_v2 = vmul.f32 %v852_v46, %v852_v46  ;;  %v293_v3 = vmul.f32 %v854_v47, %v854_v47  ;;  %v248_v8 = vadd.f32 %v852_v46, %v848_v44  ;;  %v269_v9 = vadd.f32 %v854_v47, %v850_v45 }
  0xa5   :  { %v322_v10 = vadd.f32 %v292_v2, %v290_v4  ;;  %v343_v11 = vadd.f32 %v293_v3, %v291_v5 }
  0xaa   :  { %v860_v50 = vpop.f32.mrf.mxu0  ;;  %v862_v51 = vpop.f32.mrf.mxu1 }
  0xab   :  { %v864_v52 = vpop.f32.mrf.mxu2  ;;  %v866_v53 = vpop.f32.mrf.mxu3  ;;  %v294_v6 = vmul.f32 %v860_v50, %v860_v50  ;;  %v295_v7 = vmul.f32 %v862_v51, %v862_v51  ;;  %v249_v14 = vadd.f32 %v248_v8, %v860_v50  ;;  %v270_v15 = vadd.f32 %v269_v9, %v862_v51 }
  0xad   :  { %v323_v16 = vadd.f32 %v322_v10, %v294_v6  ;;  %v344_v17 = vadd.f32 %v343_v11, %v295_v7  ;;  %v306_v10 = vmul.f32 %v856_v48, %v856_v48  ;;  %v307_v11 = vmul.f32 %v858_v49, %v858_v49 }
  0xb2   :  { %v868_v54 = vpop.f32.mrf.mxu0  ;;  %v870_v55 = vpop.f32.mrf.mxu1 }
  0xb3   :  { %v872_v56 = vpop.f32.mrf.mxu2  ;;  %v874_v57 = vpop.f32.mrf.mxu3  ;;  %v296_v12 = vmul.f32 %v868_v54, %v868_v54  ;;  %v297_v13 = vmul.f32 %v870_v55, %v870_v55  ;;  %v250_v22 = vadd.f32 %v249_v14, %v868_v54  ;;  %v271_v23 = vadd.f32 %v270_v15, %v870_v55 }
  0xb5   :  { %v324_v26 = vadd.f32 %v323_v16, %v296_v12  ;;  %v345_v27 = vadd.f32 %v344_v17, %v297_v13  ;;  %v308_v16 = vmul.f32 %v864_v52, %v864_v52  ;;  %v309_v17 = vmul.f32 %v866_v53, %v866_v53 }
  0xba   :  { %v876_v58 = vpop.f32.mrf.mxu0  ;;  %v878_v59 = vpop.f32.mrf.mxu1 }
  0xbb   :  { %v880_v60 = vpop.f32.mrf.mxu2  ;;  %v882_v61 = vpop.f32.mrf.mxu3  ;;  %v298_v18 = vmul.f32 %v876_v58, %v876_v58  ;;  %v299_v19 = vmul.f32 %v878_v59, %v878_v59  ;;  %v251_v30 = vadd.f32 %v250_v22, %v876_v58  ;;  %v272_v31 = vadd.f32 %v271_v23, %v878_v59 }
  0xbd   :  { %v325_v32 = vadd.f32 %v324_v26, %v298_v18  ;;  %v346_v33 = vadd.f32 %v345_v27, %v299_v19  ;;  %v310_v26 = vmul.f32 %v872_v56, %v872_v56  ;;  %v311_v27 = vmul.f32 %v874_v57, %v874_v57 }
  0xc2   :  { %v884_v62 = vpop.f32.mrf.mxu0  ;;  %v886_v63 = vpop.f32.mrf.mxu1 }
  0xc3   :  { %v888_v0 = vpop.f32.mrf.mxu2  ;;  %v890_v1 = vpop.f32.mrf.mxu3  ;;  %v300_v28 = vmul.f32 %v884_v62, %v884_v62  ;;  %v301_v29 = vmul.f32 %v886_v63, %v886_v63  ;;  %v252_v36 = vadd.f32 %v251_v30, %v884_v62  ;;  %v273_v37 = vadd.f32 %v272_v31, %v886_v63 }
  0xc5   :  { %v326_v38 = vadd.f32 %v325_v32, %v300_v28  ;;  %v347_v39 = vadd.f32 %v346_v33, %v301_v29  ;;  %v312_v32 = vmul.f32 %v880_v60, %v880_v60  ;;  %v313_v33 = vmul.f32 %v882_v61, %v882_v61 }
  0xca   :  { %v918_v20 = vpop.f32.mrf.mxu0  ;;  %v920_v21 = vpop.f32.mrf.mxu1 }
  0xcb   :  { %v924_v24 = vpop.f32.mrf.mxu2  ;;  %v926_v25 = vpop.f32.mrf.mxu3  ;;  %v302_v34 = vmul.f32 %v918_v20, %v918_v20  ;;  %v303_v35 = vmul.f32 %v920_v21, %v920_v21  ;;  %v253_v40 = vadd.f32 %v252_v36, %v918_v20  ;;  %v274_v41 = vadd.f32 %v273_v37, %v920_v21 }
  0xcd   :  { %v327_v42 = vadd.f32 %v326_v38, %v302_v34  ;;  %v348_v43 = vadd.f32 %v347_v39, %v303_v35  ;;  %v314_v38 = vmul.f32 %v888_v0, %v888_v0  ;;  %v315_v39 = vmul.f32 %v890_v1, %v890_v1 }
  0xd2   :  { %v942_v2 = vpop.f32.mrf.mxu0  ;;  %v944_v3 = vpop.f32.mrf.mxu1 }
  0xd3   :  { %v254_v4 = vadd.f32 %v253_v40, %v942_v2  ;;  %v304_v5 = vmul.f32 %v942_v2, %v942_v2  ;;  %v275_v6 = vadd.f32 %v274_v41, %v944_v3  ;;  %v305_v7 = vmul.f32 %v944_v3, %v944_v3  ;;  %v952_v8 = vpop.f32.mrf.mxu2  ;;  %v954_v9 = vpop.f32.mrf.mxu3 }
  0xd5   :  { %v255_v12 = vadd.f32 %v254_v4, %v856_v48  ;;  %v328_v13 = vadd.f32 %v327_v42, %v304_v5  ;;  %v276_v14 = vadd.f32 %v275_v6, %v858_v49  ;;  %v349_v15 = vadd.f32 %v348_v43, %v305_v7 }
  0xd6   :  { %v316_v6 = vmul.f32 %v924_v24, %v924_v24  ;;  %v317_v7 = vmul.f32 %v926_v25, %v926_v25 }
  0xd7   :  { %v256_v18 = vadd.f32 %v255_v12, %v864_v52  ;;  %v329_v19 = vadd.f32 %v328_v13, %v306_v10  ;;  %v277_v22 = vadd.f32 %v276_v14, %v866_v53  ;;  %v350_v23 = vadd.f32 %v349_v15, %v307_v11 }
  0xd8   :  { %v318_v14 = vmul.f32 %v952_v8, %v952_v8  ;;  %v319_v15 = vmul.f32 %v954_v9, %v954_v9 }
  0xd9   :  { %v257_v28 = vadd.f32 %v256_v18, %v872_v56  ;;  %v330_v29 = vadd.f32 %v329_v19, %v308_v16  ;;  %v278_v30 = vadd.f32 %v277_v22, %v874_v57  ;;  %v351_v31 = vadd.f32 %v350_v23, %v309_v17 }
  0xdb   :  { %v331_v34 = vadd.f32 %v330_v29, %v310_v26  ;;  %v258_v35 = vadd.f32 %v257_v28, %v880_v60  ;;  %v352_v36 = vadd.f32 %v351_v31, %v311_v27  ;;  %v279_v37 = vadd.f32 %v278_v30, %v882_v61  ;;  %v986_v4 = vpop.f32.mrf.mxu2  ;;  %v988_v5 = vpop.f32.mrf.mxu3 }
  0xdc   :  { %v320_v16 = vmul.f32 %v986_v4, %v986_v4  ;;  %v321_v17 = vmul.f32 %v988_v5, %v988_v5 }
  0xdd   :  { %v259_v40 = vadd.f32 %v258_v35, %v888_v0  ;;  %v332_v41 = vadd.f32 %v331_v34, %v312_v32  ;;  %v280_v42 = vadd.f32 %v279_v37, %v890_v1  ;;  %v353_v43 = vadd.f32 %v352_v36, %v313_v33 }
  0xdf   :  { %v260_v10 = vadd.f32 %v259_v40, %v924_v24  ;;  %v333_v11 = vadd.f32 %v332_v41, %v314_v38  ;;  %v281_v12 = vadd.f32 %v280_v42, %v926_v25  ;;  %v354_v13 = vadd.f32 %v353_v43, %v315_v39 }
  0xe1   :  { %v334_v18 = vadd.f32 %v333_v11, %v316_v6  ;;  %v355_v19 = vadd.f32 %v354_v13, %v317_v7  ;;  %v261_v22 = vadd.f32 %v260_v10, %v952_v8  ;;  %v282_v23 = vadd.f32 %v281_v12, %v954_v9 }
  0xe3   :  { %v335_v26 = vadd.f32 %v334_v18, %v318_v14  ;;  %v356_v27 = vadd.f32 %v355_v19, %v319_v15  ;;  %v262_v28 = vadd.f32 %v261_v22, %v986_v4  ;;  %v283_v29 = vadd.f32 %v282_v23, %v988_v5 }
  0xe5   :  { %v263_v30 = vrot.slane %v262_v28, 4  ;;  %v336_v31 = vadd.f32 %v335_v26, %v320_v16  ;;  %v284_v32 = vrot.slane %v283_v29, 4  ;;  %v357_v33 = vadd.f32 %v356_v27, %v321_v17 }
  0xe7   :  { %v264_v34 = vadd.f32 %v263_v30, %v262_v28  ;;  %v337_v35 = vrot.slane %v336_v31, 4  ;;  %v285_v36 = vadd.f32 %v284_v32, %v283_v29  ;;  %v358_v37 = vrot.slane %v357_v33, 4 }
  0xe9   :  { %v265_v38 = vrot.slane %v264_v34, 2  ;;  %v338_v39 = vadd.f32 %v337_v35, %v336_v31  ;;  %v286_v40 = vrot.slane %v285_v36, 2  ;;  %v359_v41 = vadd.f32 %v358_v37, %v357_v33 }
  0xeb   :  { %v339_v42 = vrot.slane %v338_v39, 2  ;;  %v360_v43 = vrot.slane %v359_v41, 2  ;;  %v266_v6 = vadd.f32 %v265_v38, %v264_v34  ;;  %v287_v7 = vadd.f32 %v286_v40, %v285_v36 }
  0xed   :  { %v340_v10 = vadd.f32 %v339_v42, %v338_v39  ;;  %v361_v11 = vadd.f32 %v360_v43, %v359_v41  ;;  %v267_v12 = vrot.slane %v266_v6, 1  ;;  %v288_v13 = vrot.slane %v287_v7, 1  ;;  %v378_v42 = vld [vmem:[%s1125_s2] sm:$0x3]  ;;  %s656_s2 = smov [#allocation2]  }
  0xef   :  { %v268_v14 = vadd.f32 %v267_v12, %v266_v6  ;;  %v289_v15 = vadd.f32 %v288_v13, %v287_v7  ;;  %v341_v17 = vrot.slane %v340_v10, 1  ;;  %v362_v18 = vrot.slane %v361_v11, 1 }
  0xf1   :  { %v364_v16 = vadd.f32 %v289_v15, %v268_v14  ;;  %v342_v19 = vadd.f32 %v341_v17, %v340_v10  ;;  %v363_v22 = vadd.f32 %v362_v18, %v361_v11  ;;  %v396_v15 = vld [vmem:[%s1126_s3] sm:$0x3]  ;;  %s547_s3 = sshll.u32 %s656_s2, 4  ;;  %s548_s3 = int_to_ptr.vmem [resolvable:$true] %s547_s3 }
  0xf3   :  { %366 = vrot.lane.b32.xlu0 %v364_v16, %s655_s0  ;;  %v365_v23 = vadd.f32 %v363_v22, %v342_v19 }
  0xfb   :  { %371 = vrot.lane.b32.xlu0 %v365_v23, %s655_s0 }
 0x165   :  { %v367_v26 = vpop.permute.xlu0 %366 }
 0x166   :  { %v370_v27 = vadd.f32 %v367_v26, %v364_v16 }
 0x168   :  { %v374_v28 = vmul.f32 0.001953125, %v370_v27 }
 0x16a   :  { %v376_v31 = vmul.f32 %v374_v28, %v374_v28 }
 0x16d   :  { %v372_v29 = vpop.permute.xlu0 %371 }
 0x16e   :  { %v373_v30 = vadd.f32 %v372_v29, %v365_v23 }
 0x170   :  { %v375_v32 = vmul.f32 0.001953125, %v373_v30 }
 0x172   :  { %v377_v33 = vsub.f32 %v375_v32, %v376_v31 }
 0x174   :  { %v379_v34 = vadd.f32 1e-05, %v377_v33 }
 0x176   :  { %627 = vrsqrt.f32 %v379_v34  ;;  %vm386_vm3 = vweird.f32 %v379_v34 }
 0x17c   :  { %v628_v35 = vpop.eup %627 }
 0x17d   :  { %v381_v36 = vmul.f32 %v628_v35, %v379_v34  ;;  %vm387_vm2 = vweird.f32 %v628_v35 }
 0x17e   :  { %vm388_vm4 = vmor %vm386_vm3, %vm387_vm2 }
 0x17f   :  { %v382_v37 = vmul.f32 %v628_v35, %v381_v36 }
 0x181   :  { %v383_v38 = vmul.f32 0.5, %v382_v37 }
 0x183   :  { %v384_v39 = vsub.f32 1.5, %v383_v38 }
 0x185   :  { %v385_v40 = vmul.f32 %v628_v35, %v384_v39 }
 0x187   :  { %v389_v41 = vsel %vm388_vm4, %v628_v35, %v385_v40 }
 0x188   :  { %v391_v43 = vrot.slane %v389_v41, 7 }
 0x18a   :  { %v393_v6 = vsel %vm392_vm5, %v389_v41, %v391_v43 }
 0x18b   :  { %v395_v7 = vmul.f32 %v393_v6, %v378_v42 }
 0x18d   :  { %v1011_v10 = vperm.slane %v395_v7, 0  ;;  %v1013_v11 = vperm.slane %v395_v7, 1 }
 0x18f   :  { %v403_v12 = vmul.f32 %v1013_v11, %v374_v28  ;;  %v402_v13 = vmul.f32 %v1011_v10, %v374_v28  ;;  %v410_v22 = vmul.f32 %v1011_v10, %v848_v44  ;;  %v411_v23 = vmul.f32 %v1013_v11, %v850_v45 }
 0x190   :  { %v412_v26 = vmul.f32 %v1011_v10, %v852_v46  ;;  %v413_v27 = vmul.f32 %v1013_v11, %v854_v47  ;;  %v414_v28 = vmul.f32 %v1011_v10, %v860_v50  ;;  %v415_v44 = vmul.f32 %v1013_v11, %v862_v51 }
 0x191   :  { %v406_v14 = vrot.slane %v403_v12, 7  ;;  %v416_v46 = vmul.f32 %v1011_v10, %v868_v54  ;;  %v417_v47 = vmul.f32 %v1013_v11, %v870_v55  ;;  %v418_v50 = vmul.f32 %v1011_v10, %v876_v58 }
 0x192   :  { %v419_v37 = vmul.f32 %v1013_v11, %v878_v59  ;;  %v420_v39 = vmul.f32 %v1011_v10, %v884_v62  ;;  %v421_v58 = vmul.f32 %v1013_v11, %v886_v63  ;;  %v422_v59 = vmul.f32 %v1011_v10, %v918_v20 }
 0x193   :  { %v407_v16 = vsel %vm392_vm5, %v402_v13, %v406_v14  ;;  %v423_v62 = vmul.f32 %v1013_v11, %v920_v21  ;;  %v424_v63 = vmul.f32 %v1011_v10, %v942_v2  ;;  %v425_v20 = vmul.f32 %v1013_v11, %v944_v3 }
 0x194   :  { %v409_v17 = vsub.f32 %v396_v15, %v407_v16  ;;  %v426_v21 = vmul.f32 %v1011_v10, %v856_v48  ;;  %v427_v2 = vmul.f32 %v1013_v11, %v858_v49  ;;  %v428_v3 = vmul.f32 %v1011_v10, %v864_v52 }
 0x195   :  { %v429_v48 = vmul.f32 %v1013_v11, %v866_v53  ;;  %v430_v49 = vmul.f32 %v1011_v10, %v872_v56  ;;  %v431_v52 = vmul.f32 %v1013_v11, %v874_v57  ;;  %v432_v53 = vmul.f32 %v1011_v10, %v880_v60 }
 0x196   :  { %v1020_v18 = vperm.slane %v409_v17, 0  ;;  %v1022_v19 = vperm.slane %v409_v17, 1  ;;  %v433_v56 = vmul.f32 %v1013_v11, %v882_v61  ;;  %v434_v57 = vmul.f32 %v1011_v10, %v888_v0 }
 0x197   :  { %v435_v60 = vmul.f32 %v1013_v11, %v890_v1  ;;  %v436_v61 = vmul.f32 %v1011_v10, %v924_v24  ;;  %v437_v0 = vmul.f32 %v1013_v11, %v926_v25  ;;  %v438_v1 = vmul.f32 %v1011_v10, %v952_v8 }
 0x198   :  { %v447_v29 = vadd.f32 %v1020_v18, %v410_v22  ;;  %v448_v30 = vadd.f32 %v1022_v19, %v411_v23  ;;  %v449_v31 = vadd.f32 %v1020_v18, %v412_v26  ;;  %v450_v45 = vadd.f32 %v1022_v19, %v413_v27 }
 0x199   :  { %v451_v32 = vadd.f32 %v1020_v18, %v414_v28  ;;  %v452_v33 = vadd.f32 %v1022_v19, %v415_v44  ;;  %v453_v34 = vadd.f32 %v1020_v18, %v416_v46  ;;  %v454_v54 = vadd.f32 %v1022_v19, %v417_v47 }
 0x19a   :  { %v479_v35 = vmax.f32 %v447_v29, 0.0  ;;  %v480_v36 = vmax.f32 %v448_v30, 0.0  ;;  %v481_v51 = vmax.f32 %v449_v31, 0.0  ;;  %v482_v38 = vmax.f32 %v450_v45, 0.0 }
 0x19b   :  { %v455_v55 = vadd.f32 %v1020_v18, %v418_v50  ;;  %v483_v40 = vmax.f32 %v451_v32, 0.0  ;;  %v456_v41 = vadd.f32 %v1022_v19, %v419_v37  ;;  %v484_v42 = vmax.f32 %v452_v33, 0.0 }
 0x19c   :  { %511 = vst [vmem:[#allocation2] sm:$0xff] %v479_v35  ;;  %v457_v43 = vadd.f32 %v1020_v18, %v420_v39  ;;  %v485_v6 = vmax.f32 %v453_v34, 0.0  ;;  %v458_v7 = vadd.f32 %v1022_v19, %v421_v58  ;;  %v486_v12 = vmax.f32 %v454_v54, 0.0 }
 0x19d   :  { %512 = vst [vmem:[#allocation2 + $0x8] sm:$0xff] %v480_v36  ;;  %v459_v13 = vadd.f32 %v1020_v18, %v422_v59  ;;  %v487_v14 = vmax.f32 %v455_v55, 0.0  ;;  %v460_v15 = vadd.f32 %v1022_v19, %v423_v62  ;;  %v488_v16 = vmax.f32 %v456_v41, 0.0 }
 0x19e   :  { %513 = vst [vmem:[#allocation2 + $0x10] sm:$0xff] %v481_v51  ;;  %v461_v17 = vadd.f32 %v1020_v18, %v424_v63  ;;  %v489_v22 = vmax.f32 %v457_v43, 0.0  ;;  %v462_v23 = vadd.f32 %v1022_v19, %v425_v20  ;;  %v490_v26 = vmax.f32 %v458_v7, 0.0 }
 0x19f   :  { %514 = vst [vmem:[#allocation2 + $0x18] sm:$0xff] %v482_v38  ;;  %v463_v27 = vadd.f32 %v1020_v18, %v426_v21  ;;  %v491_v28 = vmax.f32 %v459_v13, 0.0  ;;  %v464_v29 = vadd.f32 %v1022_v19, %v427_v2  ;;  %v492_v30 = vmax.f32 %v460_v15, 0.0 }
 0x1a0   :  { %515 = vst [vmem:[#allocation2 + $0x20] sm:$0xff] %v483_v40  ;;  %v465_v31 = vadd.f32 %v1020_v18, %v428_v3  ;;  %v493_v44 = vmax.f32 %v461_v17, 0.0  ;;  %v466_v45 = vadd.f32 %v1022_v19, %v429_v48  ;;  %v494_v46 = vmax.f32 %v462_v23, 0.0 }
 0x1a1   :  { %516 = vst [vmem:[#allocation2 + $0x28] sm:$0xff] %v484_v42  ;;  %v467_v32 = vadd.f32 %v1020_v18, %v430_v49  ;;  %v495_v47 = vmax.f32 %v463_v27, 0.0  ;;  %v468_v50 = vadd.f32 %v1022_v19, %v431_v52  ;;  %v496_v33 = vmax.f32 %v464_v29, 0.0 }
 0x1a2   :  { %517 = vst [vmem:[#allocation2 + $0x30] sm:$0xff] %v485_v6  ;;  %v469_v34 = vadd.f32 %v1020_v18, %v432_v53  ;;  %v497_v35 = vmax.f32 %v465_v31, 0.0  ;;  %v470_v36 = vadd.f32 %v1022_v19, %v433_v56  ;;  %v498_v51 = vmax.f32 %v466_v45, 0.0 }
 0x1a3   :  { %518 = vst [vmem:[#allocation2 + $0x38] sm:$0xff] %v486_v12  ;;  %v471_v37 = vadd.f32 %v1020_v18, %v434_v57  ;;  %v499_v54 = vmax.f32 %v467_v32, 0.0  ;;  %v472_v38 = vadd.f32 %v1022_v19, %v435_v60  ;;  %v500_v39 = vmax.f32 %v468_v50, 0.0 }
 0x1a4   :  { %519 = vst [vmem:[#allocation2 + $0x40] sm:$0xff] %v487_v14  ;;  %v473_v55 = vadd.f32 %v1020_v18, %v436_v61  ;;  %v501_v40 = vmax.f32 %v469_v34, 0.0  ;;  %v439_v24 = vmul.f32 %v1013_v11, %v954_v9  ;;  %v474_v58 = vadd.f32 %v1022_v19, %v437_v0 }
 0x1a5   :  { %520 = vst [vmem:[#allocation2 + $0x48] sm:$0xff] %v488_v16  ;;  %v502_v41 = vmax.f32 %v470_v36, 0.0  ;;  %v440_v25 = vmul.f32 %v1011_v10, %v986_v4  ;;  %v475_v42 = vadd.f32 %v1020_v18, %v438_v1  ;;  %v503_v59 = vmax.f32 %v471_v37, 0.0 }
 0x1a6   :  { %521 = vst [vmem:[#allocation2 + $0x50] sm:$0xff] %v489_v22  ;;  %v441_v8 = vmul.f32 %v1013_v11, %v988_v5  ;;  %v476_v43 = vadd.f32 %v1022_v19, %v439_v24  ;;  %v504_v6 = vmax.f32 %v472_v38, 0.0  ;;  %v505_v62 = vmax.f32 %v473_v55, 0.0 }
 0x1a7   :  { %522 = vst [vmem:[#allocation2 + $0x58] sm:$0xff] %v490_v26  ;;  %v477_v9 = vadd.f32 %v1020_v18, %v440_v25  ;;  %v506_v12 = vmax.f32 %v474_v58, 0.0  ;;  %v507_v4 = vmax.f32 %v475_v42, 0.0 }
 0x1a8   :  { %523 = vst [vmem:[#allocation2 + $0x60] sm:$0xff] %v491_v28  ;;  %v478_v7 = vadd.f32 %v1022_v19, %v441_v8  ;;  %v508_v10 = vmax.f32 %v476_v43, 0.0 }
 0x1a9   :  { %524 = vst [vmem:[#allocation2 + $0x68] sm:$0xff] %v492_v30  ;;  %v509_v5 = vmax.f32 %v477_v9, 0.0 }
 0x1aa   :  { %525 = vst [vmem:[#allocation2 + $0x70] sm:$0xff] %v493_v44  ;;  %v510_v11 = vmax.f32 %v478_v7, 0.0 }
 0x1ab   :  { %526 = vst [vmem:[#allocation2 + $0x78] sm:$0xff] %v494_v46 }
 0x1ac   :  { %527 = vst [vmem:[#allocation2 + $0x80] sm:$0xff] %v495_v47 }
 0x1ad   :  { %528 = vst [vmem:[#allocation2 + $0x88] sm:$0xff] %v496_v33 }
 0x1ae   :  { %529 = vst [vmem:[#allocation2 + $0x90] sm:$0xff] %v497_v35 }
 0x1af   :  { %530 = vst [vmem:[#allocation2 + $0x98] sm:$0xff] %v498_v51 }
 0x1b0   :  { %531 = vst [vmem:[#allocation2 + $0xa0] sm:$0xff] %v499_v54 }
 0x1b1   :  { %532 = vst [vmem:[#allocation2 + $0xa8] sm:$0xff] %v500_v39 }
 0x1b2   :  { %533 = vst [vmem:[#allocation2 + $0xb0] sm:$0xff] %v501_v40 }
 0x1b3   :  { %534 = vst [vmem:[#allocation2 + $0xb8] sm:$0xff] %v502_v41 }
 0x1b4   :  { %535 = vst [vmem:[#allocation2 + $0xc0] sm:$0xff] %v503_v59 }
 0x1b5   :  { %536 = vst [vmem:[#allocation2 + $0xc8] sm:$0xff] %v504_v6 }
 0x1b6   :  { %537 = vst [vmem:[#allocation2 + $0xd0] sm:$0xff] %v505_v62 }
 0x1b7   :  { %538 = vst [vmem:[#allocation2 + $0xd8] sm:$0xff] %v506_v12 }
 0x1b8   :  { %539 = vst [vmem:[#allocation2 + $0xe0] sm:$0xff] %v507_v4 }
 0x1b9   :  { %540 = vst [vmem:[#allocation2 + $0xe8] sm:$0xff] %v508_v10 }
 0x1ba   :  { %541 = vst [vmem:[#allocation2 + $0xf0] sm:$0xff] %v509_v5 }
 0x1bb   :  { %542 = vst [vmem:[#allocation2 + $0xf8] sm:$0xff] %v510_v11 }
 0x1bc   :  { %555 = dma.vmem_to_hbm [thread:$0]  %s548_s3, 4096, %s550_s29, [#allocation3], %s657_s30, %s657_s30, %s658_s5  }
 0x1bd   :  { %653 = dma.done.wait [#allocation3], 4096  }
 0x1be   :  { %654 = vsyncadd [#allocation3], 4294963200 }
 0x1bf   :  { %560 = vsyncpa [#allocation3], 1 }

</bundles_post_ra>
